<compile_context>
chip_gen: v7x
topology: tpu7x:2x2x1
jax: 0.10.0
libtpu: 0.0.40
codegen_flags: <defaults>
</compile_context>

<pallas_src>
import functools
import math

import jax
import jax.numpy as jnp
from jax.experimental import pallas as pl
from jax.experimental.pallas import tpu as pltpu


# ----------------------------------------------------------------------------
# Kernel
# ----------------------------------------------------------------------------
def _sigmoid(x):
    # Exact sigmoid; exp lands in the EUP slot, divide on the VPU.  Exact
    # parity with torch.sigmoid up to f32 rounding.
    return 1.0 / (1.0 + jnp.exp(-x))


def _autoencoder_kernel(x_ref, wg_ref, bg_ref, wh_ref, bh_ref, o_ref):
    # x_ref:  (TB, Q)  (input dtype, cast in-kernel)
    # wg_ref: (Q, Kp)  bg_ref: (1, Kp) f32
    # wh_ref: (Kp, Q)  bh_ref: (1, Q)  f32
    # o_ref:  (TB, Q)  (out_dtype)
    x = x_ref[...].astype(wg_ref.dtype)          # in-kernel cast (no extra HBM pass)
    # g layer: Linear(num_question -> k) + sigmoid, f32 MXU accumulation.
    h = jnp.dot(x, wg_ref[...], preferred_element_type=jnp.float32)
    h = _sigmoid(h + bg_ref[...])
    # h layer: Linear(k -> num_question) + sigmoid.
    y = jnp.dot(h.astype(wh_ref.dtype), wh_ref[...],
                preferred_element_type=jnp.float32)
    o_ref[...] = _sigmoid(y + bh_ref[...]).astype(o_ref.dtype)


# ----------------------------------------------------------------------------
# Wrapper helpers
# ----------------------------------------------------------------------------
def _round_up(n, m):
    return ((n + m - 1) // m) * m


@functools.lru_cache(maxsize=1)
def _tpu_topology():
    """(num_tensorcores_sharing_a_grid, physical_vmem_bytes_per_core).

    Conservative fallbacks (1 core, 64 MiB = v7x) so the kernel compiles
    everywhere even if introspection is unavailable.
    """
    cores, vmem = 1, 64 << 20
    try:
        vmem = int(pltpu.get_tpu_info().vmem_capacity_bytes)
    except Exception:
        pass
    try:
        kind = jax.devices()[0].device_kind.lower()
        # Megacore chips (2 TensorCores share one pallas_call grid): v4, v5p, v7x.
        if ("v4" in kind) or ("v5p" in kind) or ("7" in kind):
            cores = 2
    except Exception:
        pass
    return cores, vmem


def _pick_batch_tile(batch, tb, num_cores):
    """Effective batch tile (multiple of 8, the sublane width).

    * Whole batch fits one tile: use it; but on 2-TC chips split a big batch
      in two so dimension_semantics=("parallel",) shards across cores.
    * Otherwise balance the tiles (round_up(cdiv(B, n_tiles), 8)) so the last
      (ragged, Pallas-masked) block is not nearly empty.
    """
    b8 = _round_up(batch, 8)
    if b8 <= tb:
        if num_cores > 1 and b8 >= 256:
            return _round_up(pl.cdiv(b8, num_cores), 8)
        return b8
    n_tiles = pl.cdiv(batch, tb)
    return _round_up(pl.cdiv(batch, n_tiles), 8)


def _vmem_estimate(tb, q, kp, x_bytes, w_bytes, o_bytes):
    """Rough VMEM footprint: double-buffered x/out blocks, (double-buffered)
    grid-invariant weights, plus f32 intermediates."""
    io_blocks = 2 * tb * q * (x_bytes + o_bytes)
    weights = 2 * 2 * q * kp * w_bytes + 2 * 4 * (kp + q)
    intermediates = tb * kp * 4 + 2 * tb * q * 4
    return io_blocks + weights + intermediates


def prepare_params(wg, bg, wh, bh, *, matmul_dtype=jnp.bfloat16):
    """ONE-TIME conversion from the PyTorch nn.Linear layout
        g.weight: (k, num_question)   g.bias: (k,)
        h.weight: (num_question, k)   h.bias: (num_question,)
    to the kernel layout: transposed (in, out) weights in `matmul_dtype`,
    2-D f32 biases, latent dim K zero-padded to a multiple of 128 (exact: the
    padded latent units hit all-zero rows of Wh^T).  Call at parameter-setup
    time, NOT per forward call.  Pass matmul_dtype=jnp.float32 for bit-level
    parity with the f32 PyTorch module (bf16 is the perf default)."""
    wg = jnp.asarray(wg)
    bg = jnp.asarray(bg)
    wh = jnp.asarray(wh)
    bh = jnp.asarray(bh)
    k, q = wg.shape
    kp = _round_up(k, 128)
    wg_t = jnp.zeros((q, kp), matmul_dtype).at[:, :k].set(wg.T.astype(matmul_dtype))
    wh_t = jnp.zeros((kp, q), matmul_dtype).at[:k, :].set(wh.T.astype(matmul_dtype))
    bg2 = jnp.zeros((1, kp), jnp.float32).at[0, :k].set(bg.astype(jnp.float32))
    bh2 = bh.reshape(1, q).astype(jnp.float32)
    return wg_t, bg2, wh_t, bh2


# ----------------------------------------------------------------------------
# Forward
# ----------------------------------------------------------------------------
@functools.partial(jax.jit, static_argnames=("tb", "out_dtype"))
def autoencoder_forward(x, wg_t, bg2, wh_t, bh2, *, tb=None, out_dtype=None):
    """Forward pass of AutoEncoder.

    x:     (B, num_question)          user vectors (any float dtype; cast to
                                      the weight dtype inside the kernel)
    wg_t:  (num_question, Kp)         prepared by prepare_params
    bg2:   (1, Kp) f32
    wh_t:  (Kp, num_question)
    bh2:   (1, num_question) f32
    tb:        requested batch tile (None -> 512, auto-shrunk to fit VMEM)
    out_dtype: output dtype (None -> x.dtype; jnp.bfloat16 halves the
               dominant HBM write stream)
    """
    B, Q = x.shape
    Kp = wg_t.shape[1]
    out_dtype = jnp.dtype(x.dtype) if out_dtype is None else jnp.dtype(out_dtype)

    num_cores, vmem_cap = _tpu_topology()
    x_bytes = jnp.dtype(x.dtype).itemsize
    w_bytes = jnp.dtype(wg_t.dtype).itemsize
    o_bytes = out_dtype.itemsize

    tb_req = 512 if tb is None else tb
    tb_eff = _pick_batch_tile(B, tb_req, num_cores)

    # Shrink the batch tile until the footprint fits the physical VMEM budget
    # (matters on v7x's 64 MiB and with v5e's small scoped default, which we
    # override via vmem_limit_bytes below).
    budget = min(int(vmem_cap * 3 // 4), 96 << 20)
    while (tb_eff > 64
           and _vmem_estimate(tb_eff, Q, Kp, x_bytes, w_bytes, o_bytes) > budget):
        tb_eff = max(64, _round_up(tb_eff // 2, 8))

    est = _vmem_estimate(tb_eff, Q, Kp, x_bytes, w_bytes, o_bytes)
    vmem_limit = max(min(2 * est + (8 << 20), budget), 16 << 20)

    grid = (pl.cdiv(B, tb_eff),)  # ragged last block handled by Pallas masking

    return pl.pallas_call(
        _autoencoder_kernel,
        out_shape=jax.ShapeDtypeStruct((B, Q), out_dtype),
        grid_spec=pltpu.PrefetchScalarGridSpec(
            num_scalar_prefetch=0,
            grid=grid,
            in_specs=[
                pl.BlockSpec((tb_eff, Q), lambda i: (i, 0)),   # x batch tile
                pl.BlockSpec((Q, Kp), lambda i: (0, 0)),       # Wg^T (resident)
                pl.BlockSpec((1, Kp), lambda i: (0, 0)),       # bg
                pl.BlockSpec((Kp, Q), lambda i: (0, 0)),       # Wh^T (resident)
                pl.BlockSpec((1, Q), lambda i: (0, 0)),        # bh
            ],
            out_specs=pl.BlockSpec((tb_eff, Q), lambda i: (i, 0)),
        ),
        compiler_params=pltpu.CompilerParams(
            dimension_semantics=("parallel",),
            vmem_limit_bytes=int(vmem_limit),
        ),
    )(x, wg_t, bg2, wh_t, bh2)


# ----------------------------------------------------------------------------
# Parameter init (PyTorch nn.Linear-style, in PyTorch (out, in) layout)
# ----------------------------------------------------------------------------
def init_params(key, num_question, k):
    kg_w, kg_b, kh_w, kh_b = jax.random.split(key, 4)
    bound_g = 1.0 / math.sqrt(num_question)   # fan_in of g
    bound_h = 1.0 / math.sqrt(k)              # fan_in of h
    wg = jax.random.uniform(kg_w, (k, num_question), jnp.float32, -bound_g, bound_g)
    bg = jax.random.uniform(kg_b, (k,), jnp.float32, -bound_g, bound_g)
    wh = jax.random.uniform(kh_w, (num_question, k), jnp.float32, -bound_h, bound_h)
    bh = jax.random.uniform(kh_b, (num_question,), jnp.float32, -bound_h, bound_h)
    return wg, bg, wh, bh


if __name__ == "__main__":
    key = jax.random.PRNGKey(0)
    kx, kp = jax.random.split(key)

    batch = 20           # NOT a multiple of 8 -> exercises the ragged last block
    num_question = 256   # lane-aligned I/O width (caller-owned)
    k = 100              # module default -> exercises K zero-padding to 128

    x = jax.random.uniform(kx, (batch, num_question), jnp.float32)
    wg, bg, wh, bh = init_params(kp, num_question, k)

    # Plain-JAX reference (identical math to the PyTorch module).
    ref = jax.nn.sigmoid(jax.nn.sigmoid(x @ wg.T + bg) @ wh.T + bh)

    # 1) f32 parity path with a tiny tile -> multi-step grid + ragged block.
    p32 = prepare_params(wg, bg, wh, bh, matmul_dtype=jnp.float32)
    out32 = jax.block_until_ready(autoencoder_forward(x, *p32, tb=8))
    assert out32.shape == (batch, num_question) and out32.dtype == x.dtype
    assert jnp.allclose(out32, ref, atol=2e-3, rtol=2e-3)

    # 2) Default perf config: bf16 weights, in-kernel x cast, single ragged tile.
    pbf = prepare_params(wg, bg, wh, bh)   # bf16 matmul operands (default)
    out_bf = jax.block_until_ready(autoencoder_forward(x, *pbf))
    assert out_bf.shape == (batch, num_question)
    assert jnp.allclose(out_bf, ref, atol=3e-2, rtol=3e-2)

    # 3) bf16 output stream (halves the dominant HBM write; explicit opt-in).
    out_b16 = jax.block_until_ready(
        autoencoder_forward(x, *pbf, out_dtype=jnp.bfloat16))
    assert out_b16.dtype == jnp.bfloat16
    assert jnp.allclose(out_b16.astype(jnp.float32), ref, atol=5e-2, rtol=5e-2)

    print("KERNEL_OK")
</pallas_src>

<mosaic_0001>
module attributes {stable_mosaic.version = 11 : i64} {
  func.func @_autoencoder_kernel(%arg0: i32, %arg1: memref<8x256xf32, #tpu.memory_space<vmem>>, %arg2: memref<256x128xf32, #tpu.memory_space<vmem>>, %arg3: memref<1x128xf32, #tpu.memory_space<vmem>>, %arg4: memref<128x256xf32, #tpu.memory_space<vmem>>, %arg5: memref<1x256xf32, #tpu.memory_space<vmem>>, %arg6: memref<8x256xf32, #tpu.memory_space<vmem>>) attributes {dimension_semantics = [#tpu.dimension_semantics<parallel>], iteration_bounds = array<i64: 3>, scalar_prefetch = 0 : i64, scratch_operands = 0 : i64, tpu.core_type = #tpu.core_type<tc>, window_params = [{transform_indices = @transform_0, window_bounds = array<i64: 8, 256>}, {pipeline_mode = #tpu.pipeline_mode<synchronous>, transform_indices = @transform_1, window_bounds = array<i64: 256, 128>}, {pipeline_mode = #tpu.pipeline_mode<synchronous>, transform_indices = @transform_2, window_bounds = array<i64: 1, 128>}, {pipeline_mode = #tpu.pipeline_mode<synchronous>, transform_indices = @transform_3, window_bounds = array<i64: 128, 256>}, {pipeline_mode = #tpu.pipeline_mode<synchronous>, transform_indices = @transform_4, window_bounds = array<i64: 1, 256>}, {transform_indices = @transform_5, window_bounds = array<i64: 8, 256>}]} {
    %c0 = arith.constant 0 : index
    %c0_0 = arith.constant 0 : index
    %0 = vector.load %arg1[%c0, %c0_0] : memref<8x256xf32, #tpu.memory_space<vmem>>, vector<8x256xf32>
    %c0_1 = arith.constant 0 : index
    %c0_2 = arith.constant 0 : index
    %1 = vector.load %arg2[%c0_1, %c0_2] : memref<256x128xf32, #tpu.memory_space<vmem>>, vector<256x128xf32>
    %cst = arith.constant dense<0.000000e+00> : vector<8x128xf32>
    %2 = tpu.matmul %0, %1, %cst {dimension_numbers = #tpu.dot_dimension_numbers<[1], [0], [0], [1], [0, 0, 1, 1], [], []>} : vector<8x256xf32>, vector<256x128xf32>, vector<8x128xf32> -> vector<8x128xf32>
    %c0_3 = arith.constant 0 : index
    %c0_4 = arith.constant 0 : index
    %3 = vector.load %arg3[%c0_3, %c0_4] : memref<1x128xf32, #tpu.memory_space<vmem>>, vector<1x128xf32>
    %4 = vector.broadcast %3 : vector<1x128xf32> to vector<8x128xf32>
    %5 = arith.addf %2, %4 : vector<8x128xf32>
    %cst_5 = arith.constant 0.000000e+00 : f32
    %6 = vector.broadcast %cst_5 : f32 to vector<8x128xf32>
    %7 = arith.subf %6, %5 : vector<8x128xf32>
    %8 = math.exp %7 : vector<8x128xf32>
    %cst_6 = arith.constant 1.000000e+00 : f32
    %9 = vector.broadcast %cst_6 : f32 to vector<8x128xf32>
    %10 = arith.addf %9, %8 : vector<8x128xf32>
    %cst_7 = arith.constant 1.000000e+00 : f32
    %11 = vector.broadcast %cst_7 : f32 to vector<8x128xf32>
    %12 = arith.divf %11, %10 : vector<8x128xf32>
    %c0_8 = arith.constant 0 : index
    %c0_9 = arith.constant 0 : index
    %13 = vector.load %arg4[%c0_8, %c0_9] : memref<128x256xf32, #tpu.memory_space<vmem>>, vector<128x256xf32>
    %cst_10 = arith.constant dense<0.000000e+00> : vector<8x256xf32>
    %14 = tpu.matmul %12, %13, %cst_10 {dimension_numbers = #tpu.dot_dimension_numbers<[1], [0], [0], [1], [0, 0, 1, 1], [], []>} : vector<8x128xf32>, vector<128x256xf32>, vector<8x256xf32> -> vector<8x256xf32>
    %c0_11 = arith.constant 0 : index
    %c0_12 = arith.constant 0 : index
    %15 = vector.load %arg5[%c0_11, %c0_12] : memref<1x256xf32, #tpu.memory_space<vmem>>, vector<1x256xf32>
    %16 = vector.broadcast %15 : vector<1x256xf32> to vector<8x256xf32>
    %17 = arith.addf %14, %16 : vector<8x256xf32>
    %cst_13 = arith.constant 0.000000e+00 : f32
    %18 = vector.broadcast %cst_13 : f32 to vector<8x256xf32>
    %19 = arith.subf %18, %17 : vector<8x256xf32>
    %20 = math.exp %19 : vector<8x256xf32>
    %cst_14 = arith.constant 1.000000e+00 : f32
    %21 = vector.broadcast %cst_14 : f32 to vector<8x256xf32>
    %22 = arith.addf %21, %20 : vector<8x256xf32>
    %cst_15 = arith.constant 1.000000e+00 : f32
    %23 = vector.broadcast %cst_15 : f32 to vector<8x256xf32>
    %24 = arith.divf %23, %22 : vector<8x256xf32>
    %c0_16 = arith.constant 0 : index
    %c0_17 = arith.constant 0 : index
    %25 = vector.load %arg6[%c0_16, %c0_17] : memref<8x256xf32, #tpu.memory_space<vmem>>, vector<8x256xf32>
    tpu.vector_store %arg6[%c0_16, %c0_17], %24 {strides = array<i32>} : memref<8x256xf32, #tpu.memory_space<vmem>>, vector<8x256xf32>,
    return
  }
  func.func @transform_0(%arg0: i32) -> (i32, i32) {
    %c0_i32 = arith.constant 0 : i32
    %c0_i32_0 = arith.constant 0 : i32
    return %arg0, %c0_i32 : i32, i32
  }
  func.func @transform_1(%arg0: i32) -> (i32, i32) {
    %c0_i32 = arith.constant 0 : i32
    %c0_i32_0 = arith.constant 0 : i32
    %c0_i32_1 = arith.constant 0 : i32
    return %c0_i32, %c0_i32_0 : i32, i32
  }
  func.func @transform_2(%arg0: i32) -> (i32, i32) {
    %c0_i32 = arith.constant 0 : i32
    %c0_i32_0 = arith.constant 0 : i32
    %c0_i32_1 = arith.constant 0 : i32
    return %c0_i32, %c0_i32_0 : i32, i32
  }
  func.func @transform_3(%arg0: i32) -> (i32, i32) {
    %c0_i32 = arith.constant 0 : i32
    %c0_i32_0 = arith.constant 0 : i32
    %c0_i32_1 = arith.constant 0 : i32
    return %c0_i32, %c0_i32_0 : i32, i32
  }
  func.func @transform_4(%arg0: i32) -> (i32, i32) {
    %c0_i32 = arith.constant 0 : i32
    %c0_i32_0 = arith.constant 0 : i32
    %c0_i32_1 = arith.constant 0 : i32
    return %c0_i32, %c0_i32_0 : i32, i32
  }
  func.func @transform_5(%arg0: i32) -> (i32, i32) {
    %c0_i32 = arith.constant 0 : i32
    %c0_i32_0 = arith.constant 0 : i32
    return %arg0, %c0_i32 : i32, i32
  }
}

</mosaic_0001>

<bundles_post_ra>
// kernel: autoencoder_forward.1
= control target key start
LH: loop header
LB: loop body
LE: loop exit
PB: predicated region body
PF: predicated region fallthrough
CT: control target
= control target key end

     0   :  { %10 = vsyncpa [#allocation3], 0  ;;  %s1255_s0 = inlined_call_operand.hbm [shape: f32[20,256], index: 0, kind: input, shape index: {}]   ;;  %s1256_s1 = inlined_call_operand.hbm [shape: f32[256,128], index: 1, kind: input, shape index: {}]   ;;  %s1257_s2 = inlined_call_operand.vmem [shape: f32[1,128], index: 2, kind: input, shape index: {}]   ;;  %s1258_s3 = inlined_call_operand.hbm [shape: f32[128,256], index: 3, kind: input, shape index: {}]   ;;  %s1259_s4 = inlined_call_operand.vmem [shape: f32[1,256], index: 4, kind: input, shape index: {}]   ;;  %s1260_s5 = inlined_call_operand.hbm [shape: f32[20,256], index: 5, kind: output, shape index: {}]  }
   0x1   :  { %12 = vsyncpa [#allocation3 + $0x1], 0 }
   0x2   :  { %13 = vsyncpa [#allocation6], 0 }
   0x3   :  { %14 = vsyncpa [#allocation4], 0 }
   0x4   :  { %16 = vsyncpa [#allocation4 + $0x1], 0  ;;  %s1021_s18 = smov 0   ;;  %s1023_s19 = smov 0  }
   0x5   :  { %s1025_s20 = smov 0   ;;  %s1027_s21 = smov 0  }
   0x6 LB: > { %s1042_s22 = sadd.s32 4294967295, %s980_s21   ;;  %s620_s23 = sadd.s32 4294967294, %s980_s21   ;;  %s980_s21 = sphi %s1027_s21, %s1279_s21   ;;  %s976_s20 = sphi %s1025_s20, %s1278_s20   ;;  %s972_s19 = sphi %s1023_s19, %s1277_s19   ;;  %s968_s18 = sphi %s1021_s18, %s1276_s18  }
   0x7   : > { %p42_p0 = scmp.ne.s32.totalorder %s972_s19, %s968_s18  ;;  %p1261_p1 = scmp.eq.s32.totalorder %s1042_s22, 0 }
   0x8   : > { %p156_p3 = scmp.eq.s32.totalorder %s620_s23, 2  ;;  %p621_p5 = scmp.ge.s32.totalorder %s980_s21, 1 }
   0x9   : > { %p1051_p4 = por %p1261_p1, %p42_p0  ;;  %p163_p7 = scmp.lt.s32.totalorder %s980_s21, 4 }
   0xa   : > { %p1056_p6 = por %p156_p3, %p42_p0  ;;  %s982_s27 = smov [#allocation5]  }
   0xb   : > { %s1264_s24 = scalar_select %p1051_p4, 1, 0 }
   0xc   : > { %s1265_s25 = scalar_select %p1056_p6, 1, 0 }
   0xd   : > { %p1061_p8 = pnand %p621_p5, %p163_p7  ;;  %s175_s28 = sshll.u32 %s982_s27, 4  ;;  %s176_s28 = int_to_ptr.vmem [resolvable:$true] %s175_s28 }
   0xe   : > { %s983_s30 = smov [#allocation7]   ;;  %s824_s9 = scalar_lea.hbm %s1256_s1, 4096 }
   0xf   : > { %s1266_s26 = scalar_select %p1061_p8, 1, 0 }
  0x10   : > { %p752_p9 = pneg %p1061_p8  ;;  %s191_s6 = sshll.u32 %s983_s30, 4  ;;  %s1073_s6 = int_to_ptr.vmem [resolvable:$true] %s191_s6 }
  0x11   : > { %p825_p11 = scmp.ne.s32.totalorder %s1256_s1, %s824_s9  ;;  %p831_p3 = scmp.lt.u32.totalorder %s824_s9, %s1256_s1 }
  0x12   : > { %p1069_p10 = pnand %p752_p9, %p1261_p1 }
  0x14   : > { %p826_p12 = pneg %p1069_p10 }
  0x16   : > { %p827_p13 = pnand %p826_p12, %p825_p11 }
  0x18   : > { %p828_p0 = pneg %p827_p13 }
  0x1a   : > { %p833_p5 = pnand %p831_p3, %p828_p0 }
  0x1c   : > { %836 = shalt.err (!%p833_p5)
}
  0x1d   : > { %s837_s14 = scalar_lea.vmem %s176_s28, 4096  ;;  %p845_p2 = scmp.lt.s32.totalorder %s176_s28, %s176_s28 }
  0x1e   : > { %p838_p7 = scmp.ne.s32.totalorder %s176_s28, %s837_s14  ;;  %p846_p6 = scmp.lt.s32.totalorder %s837_s14, %s837_s14 }
  0x20   : > { %p840_p9 = pnand %p838_p7, %p826_p12  ;;  %p847_p4 = por %p846_p6, %p845_p2 }
  0x22   : > { %p841_p1 = pneg %p840_p9 }
  0x24   : > { %p848_p8 = pnand %p847_p4, %p841_p1 }
  0x26   : > { %851 = shalt.err (!%p848_p8)
}
  0x27   : > { %s984_s15 = smov 128   ;;  %s985_s16 = smov 8  }
  0x28   : > { %755 = dma.hbm_to_vmem [thread:$0]  (!%p1069_p10), %s1256_s1, 4096, %s176_s28, [#allocation6], %s984_s15, %s984_s15, %s985_s16  }
  0x29   : > { %s852_s7 = scalar_lea.hbm %s1258_s3, 4096 }
  0x2a   : > { %p853_p11 = scmp.ne.s32.totalorder %s1258_s3, %s852_s7  ;;  %p859_p4 = scmp.lt.u32.totalorder %s852_s7, %s1258_s3 }
  0x2c   : > { %p855_p1 = pnand %p853_p11, %p826_p12 }
  0x2e   : > { %p856_p2 = pneg %p855_p1 }
  0x30   : > { %p861_p6 = pnand %p859_p4, %p856_p2 }
  0x32   : > { %864 = shalt.err (!%p861_p6)
}
  0x33   : > { %s865_s28 = scalar_lea.vmem %s1073_s6, 4096  ;;  %p873_p3 = scmp.lt.s32.totalorder %s1073_s6, %s1073_s6 }
  0x34   : > { %p866_p8 = scmp.ne.s32.totalorder %s1073_s6, %s865_s28  ;;  %p874_p5 = scmp.lt.s32.totalorder %s865_s28, %s865_s28 }
  0x36   : > { %p868_p13 = pnand %p866_p8, %p826_p12  ;;  %p875_p7 = por %p874_p5, %p873_p3 }
  0x38   : > { %p869_p0 = pneg %p868_p13 }
  0x3a   : > { %p876_p9 = pnand %p875_p7, %p869_p0 }
  0x3c   : > { %879 = shalt.err (!%p876_p9)
}
  0x3d   : > { %s986_s12 = smov 256   ;;  %s987_s13 = smov 16  }
  0x3e   : > { %758 = dma.hbm_to_vmem [thread:$0]  (!%p1069_p10), %s1258_s3, 4096, %s1073_s6, [#allocation6], %s986_s12, %s986_s12, %s987_s13  }
  0x3f   : > { %s1123_s16 = sadd.s32 1, %s980_s21   ;;  %s29_s23 = sadd.s32 1, %s976_s20 }
  0x40   : > { %s26_s17 = ssub.s32 %s980_s21, %s1123_s16  ;;  %p36_p11 = scmp.ne.s32.totalorder %s976_s20, %s972_s19 }
  0x41   : > { %p27_p12 = scmp.eq.s32.totalorder %s26_s17, 0  ;;  %p37_p1 = scmp.eq.s32.totalorder %s980_s21, 0 }
  0x42   : > { %p1268_p4 = scmp.eq.s32.totalorder %s1042_s22, 2  ;;  %p769_p8 = scmp.lt.s32.totalorder %s980_s21, 3 }
  0x43   : > { %s1132_s27 = scalar_select %p27_p12, %s976_s20, %s29_s23  }
  0x44   : > { %p38_p2 = por %p37_p1, %p36_p11  ;;  %p1136_p6 = por %p1268_p4, %p36_p11 }
  0x45   : > { %s208_s29 = sand.u32 1, %s976_s20   ;;  %s639_s6 = sshll.u32 %s980_s21, 8 }
  0x46   : > { %s625_s7 = sshll.u32 %s208_s29, 4  ;;  %s1146_s10 = scalar_lea.hbm %s1255_s0, %s639_s6 }
  0x47   : > { %s212_s11 = scalar_lea.vmem [#allocation2], %s625_s7  ;;  %p1150_p10 = pnand %p769_p8, %p38_p2 }
  0x48   : > { %s220_s28 = sshll.u32 %s212_s11, 4  ;;  %s209_s13 = scalar_lea.sflag [#allocation3], %s208_s29  ;;  %s1148_s28 = int_to_ptr.vmem [resolvable:$true] %s220_s28 }
  0x49   : > { %s880_s14 = scalar_lea.hbm %s1146_s10, 256  ;;  %p882_p0 = pneg %p1150_p10 }
  0x4a   : > { %p881_p13 = scmp.ne.s32.totalorder %s1146_s10, %s880_s14  ;;  %s885_s23 = scalar_lea.hbm %s1255_s0, 768 }
  0x4b   : > { %p886_p7 = scmp.lt.u32.totalorder %s1146_s10, %s1255_s0  ;;  %p887_p9 = scmp.lt.u32.totalorder %s885_s23, %s880_s14 }
  0x4c   : > { %p883_p3 = pnand %p882_p0, %p881_p13  ;;  %p889_p11 = scmp.lt.u32.totalorder %s880_s14, %s1146_s10 }
  0x4d   : > { %p888_p12 = por %p887_p9, %p886_p7 }
  0x4e   : > { %p884_p5 = pneg %p883_p3 }
  0x4f   : > { %p890_p1 = por %p889_p11, %p888_p12 }
  0x51   : > { %p891_p2 = pnand %p890_p1, %p884_p5 }
  0x53   : > { %894 = shalt.err (!%p891_p2)
}
  0x54   : > { %s895_s29 = scalar_lea.vmem %s1148_s28, 256  ;;  %s988_s8 = smov [#allocation2]  }
  0x55   : > { %p896_p4 = scmp.ne.s32.totalorder %s1148_s28, %s895_s29  ;;  %s900_s9 = sshll.u32 %s988_s8, 4  ;;  %s901_s9 = int_to_ptr.vmem [resolvable:$false] %s900_s9 }
  0x56   : > { %s902_s11 = scalar_lea.vmem %s901_s9, 512  ;;  %p903_p3 = scmp.lt.s32.totalorder %s1148_s28, %s901_s9 }
  0x57   : > { %p898_p8 = pnand %p896_p4, %p882_p0  ;;  %p904_p7 = scmp.lt.s32.totalorder %s902_s11, %s895_s29 }
  0x59   : > { %p899_p13 = pneg %p898_p8  ;;  %p905_p9 = por %p904_p7, %p903_p3 }
  0x5b   : > { %p906_p12 = pnand %p905_p9, %p899_p13 }
  0x5d   : > { %909 = shalt.err (!%p906_p12)
}
  0x5e   : > { %762 = dma.hbm_to_vmem [thread:$0]  (!%p1150_p10), %s1146_s10, 256, %s1148_s28, %s209_s13  }
  0x5f   : > { %p1271_p5 = scmp.ne.s32.totalorder %s1266_s26, 0 }
  0x60   : > { %s1182_s14 = sand.u32 (!%p1271_p5), 1, %s972_s19   ;;  %p1272_p0 = scmp.ne.s32.totalorder (!%p1271_p5), %s1264_s24, 0 }
  0x61   : > { %229 = sbr.rel (%p1271_p5) target bundleno = 645 (0x285), region = 40  ;;  %s629_s15 = sshll.u32 (!%p1271_p5), %s1182_s14, 4 }
  0x62   : > { %s232_s17 = scalar_lea.sflag (!%p1271_p5), [#allocation3], %s1182_s14  ;;  %s1188_s23 = scalar_lea.vmem (!%p1271_p5), [#allocation2], %s629_s15 }
  0x68   : > { %955 = dma.done.wait (%p1272_p0), %s232_s17, 256  }
  0x69   : > { %957 = vsyncadd (%p1272_p0), %s232_s17, 4294967040  ;;  %p1273_p10 = scmp.eq.s32.totalorder %s1042_s22, 0 }
  0x6b   : > { %959 = dma.done.wait (%p1273_p10), [#allocation6], 8192   ;;  %p1274_p11 = pmov %p1273_p10 }
  0x6c   : > { %v288_v0 = vld [vmem:[#allocation5 + $0x80] sm:$0xff]  ;;  %v289_v1 = vld [vmem:[#allocation5 + $0x88] sm:$0xff]  ;;  %v290_v5 = vld [vmem:[#allocation5 + $0x90] sm:$0xff]  ;;  %s640_s12 = sshll.u32 %s1042_s22, 8  ;;  %s269_s13 = scalar_lea.vmem [#allocation8], %s629_s15 }
  0x6d   : > { %961 = vsyncadd (%p1274_p11), [#allocation6], 4294959104  ;;  %v272_v2 = vld [vmem:[#allocation5] sm:$0xff]  ;;  %v676_v3 = vpack.c.bf16 %v289_v1, %v288_v0  ;;  %v273_v4 = vld [vmem:[#allocation5 + $0x8] sm:$0xff]  ;;  %s531_s7 = sshll.u32 %s269_s13, 4  ;;  %s1212_s8 = scalar_lea.hbm %s1260_s5, %s640_s12  ;;  %s1214_s7 = int_to_ptr.vmem [resolvable:$true] %s531_s7 }
  0x6e   : > { %v291_v6 = vld [vmem:[#allocation5 + $0x98] sm:$0xff]  ;;  %v678_v7 = vpack.c.bf16 %v273_v4, %v272_v2  ;;  %v274_v9 = vld [vmem:[#allocation5 + $0x10] sm:$0xff]  ;;  %v292_v11 = vld [vmem:[#allocation5 + $0xa0] sm:$0xff]  ;;  %s517_s9 = scalar_lea.sflag [#allocation4], %s1182_s14  ;;  %s910_s11 = scalar_lea.vmem %s1214_s7, 256 }
  0x6f   : > { %v680_v8 = vpack.c.bf16 %v291_v6, %v290_v5  ;;  %v275_v10 = vld [vmem:[#allocation5 + $0x18] sm:$0xff]  ;;  %677 = vmatprep.subr.bf16.mxu0 %v676_v3  ;;  %v293_v12 = vld [vmem:[#allocation5 + $0xa8] sm:$0xff]  ;;  %v276_v15 = vld [vmem:[#allocation5 + $0x20] sm:$0xff]  ;;  %p911_p1 = scmp.ne.s32.totalorder %s1214_s7, %s910_s11  ;;  %s990_s22 = smov [#allocation8]  }
  0x70   : > { %679 = vmatpush3.bf16.msra.mxu0 %v678_v7  ;;  %v682_v13 = vpack.c.bf16 %v275_v10, %v274_v9  ;;  %v684_v14 = vpack.c.bf16 %v293_v12, %v292_v11  ;;  %v277_v16 = vld [vmem:[#allocation5 + $0x28] sm:$0xff]  ;;  %v294_v17 = vld [vmem:[#allocation5 + $0xb0] sm:$0xff]  ;;  %v295_v18 = vld [vmem:[#allocation5 + $0xb8] sm:$0xff]  ;;  %s914_s15 = sshll.u32 %s990_s22, 4  ;;  %s915_s15 = int_to_ptr.vmem [resolvable:$false] %s914_s15 }
  0x71   : > { %681 = vmatprep.subr.bf16.mxu0 %v680_v8  ;;  %v686_v19 = vpack.c.bf16 %v277_v16, %v276_v15  ;;  %v688_v20 = vpack.c.bf16 %v295_v18, %v294_v17  ;;  %v278_v21 = vld [vmem:[#allocation5 + $0x30] sm:$0xff]  ;;  %v279_v22 = vld [vmem:[#allocation5 + $0x38] sm:$0xff]  ;;  %v296_v23 = vld [vmem:[#allocation5 + $0xc0] sm:$0xff]  ;;  %p912_p2 = pnand %p911_p1, %p1136_p6  ;;  %s916_s17 = scalar_lea.vmem %s915_s15, 512 }
  0x72   : > { %v297_v24 = vld [vmem:[#allocation5 + $0xc8] sm:$0xff]  ;;  %v690_v26 = vpack.c.bf16 %v279_v22, %v278_v21  ;;  %v280_v28 = vld [vmem:[#allocation5 + $0x40] sm:$0xff]  ;;  %v298_v30 = vld [vmem:[#allocation5 + $0xd0] sm:$0xff]  ;;  %p917_p8 = scmp.lt.s32.totalorder %s1214_s7, %s915_s15  ;;  %p918_p13 = scmp.lt.s32.totalorder %s916_s17, %s910_s11 }
  0x73   : > { %v271_v25 = vld [vmem:[%s1188_s23 + $0x8] sm:$0xff]  ;;  %v692_v27 = vpack.c.bf16 %v297_v24, %v296_v23  ;;  %v282_v34 = vld [vmem:[#allocation5 + $0x50] sm:$0xff]  ;;  %v300_v36 = vld [vmem:[#allocation5 + $0xe0] sm:$0xff]  ;;  %p913_p4 = pneg %p912_p2 }
  0x74   : > { %683 = vmatpush3.bf16.msra.mxu0 %v682_v13  ;;  %375 = vmatprep.mubr.f32.mxu0 %v271_v25  ;;  %v281_v29 = vld [vmem:[#allocation5 + $0x48] sm:$0xff]  ;;  %v299_v31 = vld [vmem:[#allocation5 + $0xd8] sm:$0xff]  ;;  %v284_v40 = vld [vmem:[#allocation5 + $0x60] sm:$0xff]  ;;  %p919_p3 = por %p918_p13, %p917_p8 }
  0x75   : > { %685 = vmatprep.subr.bf16.mxu0 %v684_v14  ;;  %v694_v32 = vpack.c.bf16 %v281_v29, %v280_v28  ;;  %v696_v33 = vpack.c.bf16 %v299_v31, %v298_v30  ;;  %v283_v35 = vld [vmem:[#allocation5 + $0x58] sm:$0xff]  ;;  %v301_v37 = vld [vmem:[#allocation5 + $0xe8] sm:$0xff]  ;;  %v302_v42 = vld [vmem:[#allocation5 + $0xf0] sm:$0xff]  ;;  %v989_v29 = vmov 0.0  }
  0x76   : > { %v698_v38 = vpack.c.bf16 %v283_v35, %v282_v34  ;;  %v700_v39 = vpack.c.bf16 %v301_v37, %v300_v36  ;;  %v285_v41 = vld [vmem:[#allocation5 + $0x68] sm:$0xff]  ;;  %v303_v43 = vld [vmem:[#allocation5 + $0xf8] sm:$0xff]  ;;  %v286_v46 = vld [vmem:[#allocation5 + $0x70] sm:$0xff]  ;;  %495 = vmatprep.mubr.f32.mxu1 %v989_v29  ;;  %p920_p7 = pnand %p919_p3, %p913_p4 }
  0x77   : > { %v702_v44 = vpack.c.bf16 %v285_v41, %v284_v40  ;;  %v704_v45 = vpack.c.bf16 %v303_v43, %v302_v42  ;;  %v287_v47 = vld [vmem:[#allocation5 + $0x78] sm:$0xff]  ;;  %v270_v49 = vld [vmem:[%s1188_s23] sm:$0xff]  ;;  %v388_v50 = vld [vmem:[#allocation7 + $0x8] sm:$0xff] }
  0x78   : > { %687 = vmatpush3.bf16.msra.mxu0 %v686_v19  ;;  %v706_v48 = vpack.c.bf16 %v287_v47, %v286_v46  ;;  %v390_v51 = vld [vmem:[#allocation7 + $0x18] sm:$0xff]  ;;  %v387_v53 = vld [vmem:[#allocation7] sm:$0xff]  ;;  %v389_v54 = vld [vmem:[#allocation7 + $0x10] sm:$0xff] }
  0x79   : > { %689 = vmatprep.subr.bf16.mxu0 %v688_v20  ;;  %v708_v52 = vpack.c.bf16 %v390_v51, %v388_v50  ;;  %v710_v55 = vpack.c.bf16 %v389_v54, %v387_v53  ;;  %v392_v56 = vld [vmem:[#allocation7 + $0x28] sm:$0xff]  ;;  %v394_v57 = vld [vmem:[#allocation7 + $0x38] sm:$0xff]  ;;  %v391_v59 = vld [vmem:[#allocation7 + $0x20] sm:$0xff] }
  0x7a   : > { %v712_v58 = vpack.c.bf16 %v394_v57, %v392_v56  ;;  %v393_v60 = vld [vmem:[#allocation7 + $0x30] sm:$0xff]  ;;  %v396_v62 = vld [vmem:[#allocation7 + $0x48] sm:$0xff]  ;;  %v398_v63 = vld [vmem:[#allocation7 + $0x58] sm:$0xff] }
  0x7b   : > { %709 = vmatprep.subr.bf16.mxu1 %v708_v52  ;;  %v714_v61 = vpack.c.bf16 %v393_v60, %v391_v59  ;;  %v716_v0 = vpack.c.bf16 %v398_v63, %v396_v62  ;;  %v395_v1 = vld [vmem:[#allocation7 + $0x40] sm:$0xff]  ;;  %v397_v2 = vld [vmem:[#allocation7 + $0x50] sm:$0xff]  ;;  %v400_v4 = vld [vmem:[#allocation7 + $0x68] sm:$0xff] }
  0x7c   : > { %691 = vmatpush3.bf16.msra.mxu0 %v690_v26  ;;  %711 = vmatpush1.bf16.msra.mxu1 %v710_v55  ;;  %v718_v3 = vpack.c.bf16 %v397_v2, %v395_v1  ;;  %v402_v5 = vld [vmem:[#allocation7 + $0x78] sm:$0xff]  ;;  %v399_v7 = vld [vmem:[#allocation7 + $0x60] sm:$0xff]  ;;  %v401_v8 = vld [vmem:[#allocation7 + $0x70] sm:$0xff] }
  0x7d   : > { %693 = vmatprep.subr.bf16.mxu0 %v692_v27  ;;  %713 = vmatprep.subr.bf16.mxu1 %v712_v58  ;;  %v720_v6 = vpack.c.bf16 %v402_v5, %v400_v4  ;;  %v722_v9 = vpack.c.bf16 %v401_v8, %v399_v7  ;;  %v404_v10 = vld [vmem:[#allocation7 + $0x88] sm:$0xff]  ;;  %v406_v11 = vld [vmem:[#allocation7 + $0x98] sm:$0xff]  ;;  %v403_v13 = vld [vmem:[#allocation7 + $0x80] sm:$0xff] }
  0x7e   : > { %v724_v12 = vpack.c.bf16 %v406_v11, %v404_v10  ;;  %v405_v14 = vld [vmem:[#allocation7 + $0x90] sm:$0xff]  ;;  %v408_v16 = vld [vmem:[#allocation7 + $0xa8] sm:$0xff]  ;;  %v410_v17 = vld [vmem:[#allocation7 + $0xb8] sm:$0xff] }
  0x7f   : > { %v726_v15 = vpack.c.bf16 %v405_v14, %v403_v13  ;;  %v728_v18 = vpack.c.bf16 %v410_v17, %v408_v16  ;;  %v407_v19 = vld [vmem:[#allocation7 + $0xa0] sm:$0xff]  ;;  %v409_v20 = vld [vmem:[#allocation7 + $0xb0] sm:$0xff]  ;;  %v412_v22 = vld [vmem:[#allocation7 + $0xc8] sm:$0xff] }
  0x80   : > { %695 = vmatpush3.bf16.msra.mxu0 %v694_v32  ;;  %715 = vmatpush1.bf16.msra.mxu1 %v714_v61  ;;  %v730_v21 = vpack.c.bf16 %v409_v20, %v407_v19  ;;  %v414_v23 = vld [vmem:[#allocation7 + $0xd8] sm:$0xff]  ;;  %v411_v24 = vld [vmem:[#allocation7 + $0xc0] sm:$0xff]  ;;  %v413_v26 = vld [vmem:[#allocation7 + $0xd0] sm:$0xff] }
  0x81   : > { %697 = vmatprep.subr.bf16.mxu0 %v696_v33  ;;  %717 = vmatprep.subr.bf16.mxu1 %v716_v0  ;;  %v732_v25 = vpack.c.bf16 %v414_v23, %v412_v22  ;;  %v416_v27 = vld [vmem:[#allocation7 + $0xe8] sm:$0xff]  ;;  %v418_v28 = vld [vmem:[#allocation7 + $0xf8] sm:$0xff]  ;;  %v734_v30 = vpack.c.bf16 %v413_v26, %v411_v24  ;;  %v415_v32 = vld [vmem:[#allocation7 + $0xe0] sm:$0xff] }
  0x82   : > { %v736_v31 = vpack.c.bf16 %v418_v28, %v416_v27  ;;  %v417_v33 = vld [vmem:[#allocation7 + $0xf0] sm:$0xff]  ;;  %v633_v36 = vld [vmem:[%s1257_s2] ss:$0 sm:$0xff] }
  0x83   : > { %v738_v34 = vpack.c.bf16 %v417_v33, %v415_v32 }
  0x84   : > { %699 = vmatpush3.bf16.msra.mxu0 %v698_v38  ;;  %719 = vmatpush1.bf16.msra.mxu1 %v718_v3 }
  0x85   : > { %701 = vmatprep.subr.bf16.mxu0 %v700_v39  ;;  %721 = vmatprep.subr.bf16.mxu1 %v720_v6 }
  0x88   : > { %703 = vmatpush3.bf16.msra.mxu0 %v702_v44  ;;  %723 = vmatpush1.bf16.msra.mxu1 %v722_v9 }
  0x89   : > { %705 = vmatprep.subr.bf16.mxu0 %v704_v45  ;;  %725 = vmatprep.subr.bf16.mxu1 %v724_v12  ;;  %v421_v45 = vlaneseq }
  0x8b   : > { %v422_v46 = vshrl.u32 %v421_v45, 7 }
  0x8c   : > { %707 = vmatpush3.bf16.msra.mxu0 %v706_v48  ;;  %727 = vmatpush1.bf16.msra.mxu1 %v726_v15  ;;  %v419_v48 = vld [vmem:[%s1259_s4] sm:$0x3] }
  0x8d   : > { %729 = vmatprep.subr.bf16.mxu1 %v728_v18  ;;  %v423_v47 = vsub.s32 0, %v422_v46 }
  0x8f   : > { %376 = vmatmul.mubr.f32.vlgmr.msra.gmra.mrb[0].mxu0 %v270_v49  ;;  %v427_v49 = vsub.s32 1, %v422_v46  ;;  %v424_v50 = vrot.slane %v419_v48, %v423_v47 }
  0x90   : > { %731 = vmatpush1.bf16.msra.mxu1 %v730_v21 }
  0x91   : > { %733 = vmatprep.subr.bf16.mxu1 %v732_v25  ;;  %v428_v51 = vrot.slane %v419_v48, %v427_v49 }
  0x94   : > { %735 = vmatpush1.bf16.msra.mxu1 %v734_v30 }
  0x95   : > { %737 = vmatprep.subr.bf16.mxu1 %v736_v31 }
  0x98   : > { %739 = vmatpush1.bf16.msra.mxu1 %v738_v34 }
 0x162   : > { %v673_v35 = vpop.f32.mrb[0].mxu0 }
 0x163   : > { %v674_v37 = vpop.f32.mrb[1].mxu0 }
 0x164   : > { %v675_v38 = vadd.f32 %v674_v37, %v673_v35 }
 0x166   : > { %v378_v39 = vadd.f32 %v675_v38, %v633_v36 }
 0x168   : > { %v381_v40 = vsub.f32 0.0, %v378_v39 }
 0x16a   : > { %v382_v41 = vmul.f32 1.442695, %v381_v40 }
 0x16c   : > { %812 = vpow2.f32 %v382_v41 }
 0x176   : > { %v813_v42 = vpop.eup %812 }
 0x177   : > { %v384_v43 = vadd.f32 1.0, %v813_v42 }
 0x179   : > { %814 = vrcp.f32 %v384_v43 }
 0x183   : > { %v815_v44 = vpop.eup %814 }
 0x184   : > { %496 = vmatmul.mubr.f32.vlgmr.msra.gmra.mrb[0].mxu1 %v815_v44 }
 0x257   : > { %v497_v52 = vpop.f32.mrb[0].mxu1 }
 0x258   : > { %v498_v53 = vadd.f32 %v497_v52, %v424_v50  ;;  %v499_v54 = vpop.f32.mrb[1].mxu1 }
 0x259   : > { %v500_v55 = vadd.f32 %v499_v54, %v428_v51 }
 0x25a   : > { %v502_v56 = vsub.f32 0.0, %v498_v53 }
 0x25b   : > { %v503_v57 = vsub.f32 0.0, %v500_v55 }
 0x25c   : > { %v504_v58 = vmul.f32 1.442695, %v502_v56 }
 0x25d   : > { %v506_v59 = vmul.f32 1.442695, %v503_v57 }
 0x25e   : > { %816 = vpow2.f32 %v504_v58 }
 0x25f   : > { %818 = vpow2.f32 %v506_v59 }
 0x268   : > { %v817_v60 = vpop.eup %816 }
 0x269   : > { %v819_v61 = vpop.eup %818  ;;  %v508_v62 = vadd.f32 1.0, %v817_v60 }
 0x26a   : > { %v509_v63 = vadd.f32 1.0, %v819_v61 }
 0x26b   : > { %820 = vrcp.f32 %v508_v62 }
 0x26c   : > { %822 = vrcp.f32 %v509_v63 }
 0x275   : > { %v821_v0 = vpop.eup %820 }
 0x276   : > { %v823_v1 = vpop.eup %822  ;;  %514 = vst [vmem:[%s269_s13] sm:$0xff] %v821_v0 }
 0x277   : > { %515 = vst [vmem:[%s269_s13 + $0x8] sm:$0xff] %v823_v1 }
 0x278   : > { %923 = shalt.err (!%p920_p7)
}
 0x279   : > { %s924_s14 = scalar_lea.hbm %s1212_s8, 256  ;;  %s928_s26 = scalar_lea.hbm %s1260_s5, 768 }
 0x27a   : > { %p925_p9 = scmp.ne.s32.totalorder %s1212_s8, %s924_s14  ;;  %p929_p0 = scmp.lt.u32.totalorder %s1212_s8, %s1260_s5 }
 0x27b   : > { %p930_p10 = scmp.lt.u32.totalorder %s928_s26, %s924_s14  ;;  %p932_p1 = scmp.lt.u32.totalorder %s924_s14, %s1212_s8 }
 0x27c   : > { %p926_p12 = pnand %p925_p9, %p1136_p6 }
 0x27d   : > { %p931_p11 = por %p930_p10, %p929_p0 }
 0x27e   : > { %p927_p5 = pneg %p926_p12 }
 0x27f   : > { %p933_p2 = por %p932_p1, %p931_p11 }
 0x281   : > { %p934_p4 = pnand %p933_p2, %p927_p5 }
 0x283   : > { %937 = shalt.err (!%p934_p4)
}
 0x284   : > { %750 = dma.vmem_to_hbm [thread:$0]  (%p1136_p6), %s1214_s7, 256, %s1212_s8, %s517_s9  }
 0x285 PF: > { %p772_p8 = scmp.ge.s32.totalorder %s980_s21, 2  ;;  %s543_s12 = sand.u32 1, %s968_s18  }
 0x286   : > { %p1275_p13 = scmp.ne.s32.totalorder %s1265_s25, 0  ;;  %s544_s13 = scalar_lea.sflag [#allocation4], %s543_s12 }
 0x288   : > { %p764_p3 = pnand %p772_p8, %p1275_p13 }
 0x28a   : > { %963 = dma.done.wait (!%p764_p3), %s544_s13, 256  }
 0x28b   : > { %965 = vsyncadd (!%p764_p3), %s544_s13, 4294967040  ;;  %p19_p7 = scmp.ge.s32.totalorder %s1123_s16, 5   ;;  %s1276_s18 = smov %s972_s19 }
 0x28c   : > { %s1277_s19 = smov %s976_s20  ;;  %s1278_s20 = smov %s1132_s27 }
 0x28d   : > { %s1279_s21 = smov %s1123_s16  ;;  %21 = sbr.rel (!%p19_p7) target bundleno = 6 (0x6), region = 93 }
 0x294   :  { %549 = vsyncpa [#allocation3], 1 }
 0x295   :  { %551 = vsyncpa [#allocation3 + $0x1], 1 }
 0x296   :  { %552 = vsyncpa [#allocation6], 1 }
 0x297   :  { %553 = vsyncpa [#allocation4], 1 }
 0x298   :  { %555 = vsyncpa [#allocation4 + $0x1], 1 }

</bundles_post_ra>
